<compile_context>
chip_gen: v6e
topology: v6e:2x2x1
jax: 0.10.0
libtpu: 0.0.40
codegen_flags: <defaults>
</compile_context>

<pallas_src>
import functools
import math

import jax
import jax.numpy as jnp
from jax import lax
from jax.experimental import pallas as pl
from jax.experimental.pallas import tpu as pltpu


def _round_up(x, m):
    return (x + m - 1) // m * m


def _cdiv(a, b):
    return -(-a // b)


# ---------------------------------------------------------------------------
# Kernel (per-tap variant, for large C_in):
#   K*K shifted matmuls, contraction over C_in.  The weight tap is modulated by the
#   per-sample style in-kernel (K*K*Tc*C_in mults per step -- negligible vs the matmul
#   and avoids any cross-grid-step scratch dependence).
# ---------------------------------------------------------------------------
def _conv_taps_kernel(s_ref, osc_ref, x_ref, w_ref, out_ref, *, K, Wp, n_out):
    # s_ref  : (1, 1, C_in)        f32
    # osc_ref: (1, Tc, 1)          f32   (= conv_scale * demod, per output channel)
    # x_ref  : (1, 1, C_in, L)     compute dtype (spatially padded, flattened row tile)
    # w_ref  : (K*K, Tc, C_in)     compute dtype
    # out_ref: (1, 1, Tc, n_out)   n_out is a multiple of 128 (lane-dense stores)
    s = s_ref[0].astype(w_ref.dtype)                       # (1, C_in)
    tc = w_ref.shape[1]
    acc = jnp.zeros((tc, n_out), dtype=jnp.float32)
    for kh in range(K):                                    # K*K fully unrolled
        for kw in range(K):
            off = kh * Wp + kw                             # static offset
            xs = x_ref[0, 0, :, off:off + n_out]           # (C_in, n_out)
            wk = w_ref[kh * K + kw] * s                    # modulated weight tap (Tc, C_in)
            acc = acc + jnp.dot(wk, xs, preferred_element_type=jnp.float32)
    out_ref[0, 0] = (acc * osc_ref[0]).astype(out_ref.dtype)


# ---------------------------------------------------------------------------
# Kernel (im2col variant, for small C_in):
#   Build a (K*K*C_in, n_out) slab of shifted, style-modulated activations in VMEM,
#   then ONE matmul with contraction K*K*C_in (much better MXU utilization when
#   C_in << 128/256).
# ---------------------------------------------------------------------------
def _conv_im2col_kernel(s_ref, osc_ref, x_ref, w_ref, out_ref, slab_ref, *, K, Wp, n_out):
    # s_ref   : (1, C_in, 1)        f32
    # osc_ref : (1, Tc, 1)          f32
    # x_ref   : (1, 1, C_in, L)     compute dtype
    # w_ref   : (Tc, K*K*C_in)      compute dtype, columns ordered (kh, kw, ci)
    # out_ref : (1, 1, Tc, n_out)
    # slab_ref: VMEM (K*K*C_in, n_out) compute dtype
    c_in = s_ref.shape[1]
    s = s_ref[0]                                           # (C_in, 1) f32
    for kh in range(K):
        for kw in range(K):
            off = kh * Wp + kw
            row0 = (kh * K + kw) * c_in
            slab_ref[row0:row0 + c_in, :] = (
                x_ref[0, 0, :, off:off + n_out] * s).astype(slab_ref.dtype)
    acc = jnp.dot(w_ref[...], slab_ref[...], preferred_element_type=jnp.float32)
    out_ref[0, 0] = (acc * osc_ref[0]).astype(out_ref.dtype)


# ---------------------------------------------------------------------------
# Wrapper
# ---------------------------------------------------------------------------
def modulated_conv2d(x, style, conv_weight, mod_weight, mod_bias, *,
                     demodulate=True, lr_mul=1.0, eps=1e-8,
                     first_k_oup=None, upsample=False, downsample=False,
                     mxu_dtype=None, im2col=None, cout_tile=None, row_tile=None):
    """ModulatedConv2d.forward (non-upsample path).

    x           : (B, C_in, H, W)
    style       : (B, style_dim)
    conv_weight : (1, C_out, C_in_full, K, K) or (C_out, C_in_full, K, K)
    mod_weight  : (C_in_full, style_dim)  EqualLinear weight (already /lr_mul at init)
    mod_bias    : (C_in_full,)            EqualLinear bias (bias_init=1 in the module)
    mxu_dtype   : dtype fed to the MXU (default: bf16 for half-precision inputs,
                  otherwise the input dtype).
    im2col / cout_tile / row_tile : optional overrides for testing / tuning.
    """
    if downsample:
        raise NotImplementedError("Downsample is not implemented (matches reference assert).")
    if upsample:
        # TODO(synk): upsample path (stride-2 conv_transpose2d + Blur/upfirdn2d) not implemented.
        raise NotImplementedError("Upsample path is not implemented in this Pallas kernel.")

    B, C_in, H, W = x.shape
    w_full = conv_weight[0] if conv_weight.ndim == 5 else conv_weight
    C_out_full, C_in_full, K, K2 = w_full.shape
    assert K == K2 and K % 2 == 1, "odd kernel_size expected (padding = K // 2)"
    assert C_in <= C_in_full

    S = style.shape[1]
    conv_scale = 1.0 / math.sqrt(C_in_full * K * K)   # uses declared in_channel (as in torch)
    mod_scale = 1.0 / math.sqrt(S) * lr_mul

    n_oup = C_out_full if first_k_oup is None else int(first_k_oup)
    assert n_oup <= C_out_full
    w = w_full[:n_oup, :C_in]                         # (C_out, C_in, K, K)
    C_out = n_oup

    out_dtype = x.dtype
    f32 = jnp.float32

    # MXU compute dtype: bf16 for half-precision inputs (perf feedback), else input dtype.
    if mxu_dtype is None:
        cdt = jnp.bfloat16 if x.dtype in (jnp.bfloat16, jnp.float16) else x.dtype
    else:
        cdt = jnp.dtype(mxu_dtype)
    csz = jnp.dtype(cdt).itemsize
    osz = jnp.dtype(out_dtype).itemsize

    # Taps-in-contraction (im2col) for small C_in, per-tap for large C_in.
    use_im2col = (C_in <= 128) if im2col is None else bool(im2col)

    # ---- style modulation (EqualLinear, activation=None) + demodulation scale ----
    # Tiny (B x S) matmul: plain jnp in the wrapper (feedback: drop the separate kernel).
    s = (style.astype(f32) @ jnp.transpose(mod_weight[:C_in].astype(f32))) * mod_scale \
        + mod_bias[:C_in].astype(f32) * lr_mul                                 # (B, C_in)
    if demodulate:
        wsq = jnp.sum(w.astype(f32) ** 2, axis=(2, 3))                         # (C_out, C_in)
        var = (s * s) @ jnp.transpose(wsq)                                     # (B, C_out)
        osc = conv_scale * lax.rsqrt(conv_scale * conv_scale * var + eps)
    else:
        osc = jnp.full((B, C_out), conv_scale, dtype=f32)

    # ---- tile selection ----
    pad = K // 2
    Wp = W + 2 * pad

    if cout_tile is not None:
        Tc = max(1, min(int(cout_tile), C_out))
    else:
        Tc = min(C_out, 256)
    if Tc < C_out:
        Tc = _round_up(Tc, 8)                         # keep (8,128) block legality
        if Tc >= C_out:
            Tc = C_out
    n_ct = _cdiv(C_out, Tc)
    Cp = n_ct * Tc                                    # C_out padded to a multiple of Tc

    try:
        vmem_cap = int(pltpu.get_tpu_info().vmem_capacity_bytes)
    except Exception:
        vmem_cap = 64 * 1024 * 1024                   # conservative (v7x per-TensorCore)
    tile_budget = int(0.55 * vmem_cap)                # leave headroom under the limit

    def _footprint(tr):
        n_out_t_ = _round_up(tr * Wp, 128)
        l_t_ = _round_up(n_out_t_ + (K - 1) * (Wp + 1), 128)
        fp = 2 * C_in * l_t_ * csz                    # x block (double buffered)
        fp += 2 * Tc * n_out_t_ * osz                 # out block (double buffered)
        fp += 2 * K * K * Tc * C_in * csz             # weight block (double buffered)
        fp += Tc * n_out_t_ * 4                       # f32 accumulator temp
        fp += 4 * (C_in + Tc) * 4 * 8                 # s / osc blocks (tiny)
        if use_im2col:
            fp += K * K * C_in * n_out_t_ * csz       # im2col slab scratch
        return fp

    if row_tile is not None:
        Tr = max(1, min(int(row_tile), H))
        n_rt = _cdiv(H, Tr)
    else:
        n_rt = 1
        while n_rt < H and _footprint(_cdiv(H, n_rt)) > tile_budget:
            n_rt += 1
        Tr = _cdiv(H, n_rt)

    n_out_t = _round_up(Tr * Wp, 128)                 # lane-dense (128-aligned) output width
    L_t = _round_up(n_out_t + (K - 1) * (Wp + 1), 128)  # input slab length per row tile
    rows_t = Tr + 2 * pad                             # input rows needed per row tile

    vmem_limit = int(min(0.75 * vmem_cap, max(32 * 1024 * 1024, 4 * _footprint(Tr))))

    # ---- activation slabs: one flattened, zero-padded row tile per (b, r) ----
    Hbig = n_rt * Tr + 2 * pad
    x_pad = jnp.pad(x, ((0, 0), (0, 0), (pad, Hbig - H - pad), (pad, pad)))  # (B,C_in,Hbig,Wp)
    if n_rt == 1:
        x_tiles = x_pad.reshape(B, C_in, Hbig * Wp)[:, None]                 # (B,1,C_in,rows_t*Wp)
    else:
        row_idx = (jnp.arange(n_rt)[:, None] * Tr + jnp.arange(rows_t)[None, :]).reshape(-1)
        xg = jnp.take(x_pad, row_idx, axis=2)                                # (B,C_in,n_rt*rows_t,Wp)
        xg = xg.reshape(B, C_in, n_rt, rows_t, Wp)
        x_tiles = jnp.transpose(xg, (0, 2, 1, 3, 4)).reshape(B, n_rt, C_in, rows_t * Wp)
    flat_len = rows_t * Wp
    x_tiles = jnp.pad(x_tiles, ((0, 0), (0, 0), (0, 0), (0, L_t - flat_len))).astype(cdt)

    # ---- weight / epilogue-scale operands (one-time layout plumbing, wrapper-side cast) ----
    if Cp > C_out:
        w_p = jnp.pad(w, ((0, Cp - C_out), (0, 0), (0, 0), (0, 0)))
        osc_p = jnp.pad(osc, ((0, 0), (0, Cp - C_out)))
    else:
        w_p, osc_p = w, osc

    if use_im2col:
        # (C_out,C_in,K,K) -> (Cp, K*K*C_in), columns ordered (kh, kw, ci) to match the slab.
        w_in = jnp.transpose(w_p, (0, 2, 3, 1)).reshape(Cp, K * K * C_in).astype(cdt)
        w_spec = pl.BlockSpec((Tc, K * K * C_in), lambda b, r, c: (c, 0))
        s_in = s.reshape(B, C_in, 1)
        s_spec = pl.BlockSpec((1, C_in, 1), lambda b, r, c: (b, 0, 0))
        scratch = [pltpu.VMEM((K * K * C_in, n_out_t), cdt)]
        kern = functools.partial(_conv_im2col_kernel, K=K, Wp=Wp, n_out=n_out_t)
    else:
        # (C_out,C_in,K,K) -> (K*K, Cp, C_in): per-tap weight, plain dot, no in-kernel .T
        w_in = jnp.transpose(w_p, (2, 3, 0, 1)).reshape(K * K, Cp, C_in).astype(cdt)
        w_spec = pl.BlockSpec((K * K, Tc, C_in), lambda b, r, c: (0, c, 0))
        s_in = s.reshape(B, 1, C_in)
        s_spec = pl.BlockSpec((1, 1, C_in), lambda b, r, c: (b, 0, 0))
        scratch = []
        kern = functools.partial(_conv_taps_kernel, K=K, Wp=Wp, n_out=n_out_t)

    osc_in = osc_p.reshape(B, Cp, 1)

    flops = 2 * B * n_rt * Cp * C_in * K * K * n_out_t
    w_reads = 1 if n_ct == 1 else B * n_rt           # weight re-fetched along the c axis
    bytes_accessed = (B * n_rt * C_in * L_t * csz            # x (resident across c tiles)
                      + B * n_rt * Cp * n_out_t * osz        # output
                      + w_reads * Cp * C_in * K * K * csz    # weight
                      + B * (C_in + Cp) * 4)
    cost = pl.CostEstimate(flops=int(flops), transcendentals=0,
                           bytes_accessed=int(bytes_accessed))

    out_tiles = pl.pallas_call(
        kern,
        out_shape=jax.ShapeDtypeStruct((B, n_rt, Cp, n_out_t), out_dtype),
        grid=(B, n_rt, n_ct),                        # C_out tiles innermost: x stays resident
        in_specs=[
            s_spec,
            pl.BlockSpec((1, Tc, 1), lambda b, r, c: (b, c, 0)),
            pl.BlockSpec((1, 1, C_in, L_t), lambda b, r, c: (b, r, 0, 0)),
            w_spec,
        ],
        out_specs=pl.BlockSpec((1, 1, Tc, n_out_t), lambda b, r, c: (b, r, c, 0)),
        scratch_shapes=scratch,
        compiler_params=pltpu.CompilerParams(
            dimension_semantics=("parallel", "parallel", "parallel"),
            vmem_limit_bytes=vmem_limit),
        cost_estimate=cost,
    )(s_in, osc_in, x_tiles, w_in)

    # Trim channel padding, lane padding and row-tile padding (layout plumbing only).
    out = out_tiles[:, :, :C_out, :Tr * Wp]
    out = out.reshape(B, n_rt, C_out, Tr, Wp)
    out = jnp.transpose(out, (0, 2, 1, 3, 4)).reshape(B, C_out, n_rt * Tr, Wp)
    return out[:, :, :H, :W]


# ---------------------------------------------------------------------------
# Pure-JAX reference mirroring the PyTorch forward (weight modulation + grouped conv)
# ---------------------------------------------------------------------------
def _reference(x, style, conv_weight, mod_weight, mod_bias, *,
               demodulate=True, lr_mul=1.0, eps=1e-8, first_k_oup=None):
    B, C_in, H, W = x.shape
    w_full = conv_weight[0] if conv_weight.ndim == 5 else conv_weight
    C_out_full, C_in_full, K, _ = w_full.shape
    S = style.shape[1]
    mod_scale = 1.0 / math.sqrt(S) * lr_mul
    conv_scale = 1.0 / math.sqrt(C_in_full * K * K)

    s = style @ (mod_weight * mod_scale).T + mod_bias * lr_mul          # EqualLinear
    s = s[:, :C_in]

    n_oup = C_out_full if first_k_oup is None else int(first_k_oup)
    w = w_full[:n_oup, :C_in]
    wmod = conv_scale * w[None] * s[:, None, :, None, None]             # (B,C_out,C_in,K,K)
    if demodulate:
        demod = lax.rsqrt(jnp.sum(wmod ** 2, axis=(2, 3, 4), keepdims=True) + eps)
        wmod = wmod * demod

    pad = K // 2

    def conv_one(xb, wb):
        return lax.conv_general_dilated(
            xb[None].astype(jnp.float32), wb.astype(jnp.float32),
            window_strides=(1, 1), padding=((pad, pad), (pad, pad)),
            dimension_numbers=('NCHW', 'OIHW', 'NCHW'))[0]

    return jax.vmap(conv_one)(x, wmod).astype(x.dtype)


if __name__ == "__main__":
    key = jax.random.PRNGKey(0)
    kx, ks, kw, km = jax.random.split(key, 4)

    B, C_in, C_out_full, K, S = 2, 4, 12, 3, 16
    H = W = 16

    x = jax.random.normal(kx, (B, C_in, H, W), dtype=jnp.float32)
    style = jax.random.normal(ks, (B, S), dtype=jnp.float32)
    # ModulatedConv2d params: weight ~ randn(1, out, in, K, K); modulation EqualLinear
    # (lr_mul=1 -> weight ~ randn(in, style_dim)), bias_init=1.
    conv_weight = jax.random.normal(kw, (1, C_out_full, C_in, K, K), dtype=jnp.float32)
    mod_weight = jax.random.normal(km, (C_in, S), dtype=jnp.float32)
    mod_bias = jnp.ones((C_in,), dtype=jnp.float32)

    def check(out, ref, atol, rtol, name):
        out = jax.block_until_ready(out)
        o = jnp.asarray(out, jnp.float32)
        r = jnp.asarray(ref, jnp.float32)
        good = out.shape == ref.shape and bool(jnp.allclose(o, r, atol=atol, rtol=rtol))
        if not good:
            err = float(jnp.max(jnp.abs(o - r))) if out.shape == ref.shape else float("nan")
            print(f"MISMATCH in {name}: max abs err = {err:.3e}")
        return good

    ok = True

    # 1/2: f32, im2col path (auto for C_in=4), with and without demodulation.
    for demod in (True, False):
        out = modulated_conv2d(x, style, conv_weight, mod_weight, mod_bias,
                               demodulate=demod, first_k_oup=8)
        ref = _reference(x, style, conv_weight, mod_weight, mod_bias,
                         demodulate=demod, first_k_oup=8)
        ok = check(out, ref, 1e-4, 1e-4, f"f32 im2col demod={demod}") and ok

    # 3: f32, per-tap (large-C_in) path.
    out = modulated_conv2d(x, style, conv_weight, mod_weight, mod_bias,
                           demodulate=True, first_k_oup=8, im2col=False)
    ref = _reference(x, style, conv_weight, mod_weight, mod_bias,
                     demodulate=True, first_k_oup=8)
    ok = check(out, ref, 1e-4, 1e-4, "f32 per-tap") and ok

    # 4/5: exercise C_out tiling + channel padding (Cp=16 > C_out=12) and row tiling
    #      (Tr=5 -> n_rt=4, padded rows trimmed), for both kernel variants.
    for use_im2col in (True, False):
        out = modulated_conv2d(x, style, conv_weight, mod_weight, mod_bias,
                               demodulate=True, im2col=use_im2col,
                               cout_tile=8, row_tile=5)
        ref = _reference(x, style, conv_weight, mod_weight, mod_bias, demodulate=True)
        ok = check(out, ref, 1e-4, 1e-4, f"f32 tiled im2col={use_im2col}") and ok

    # 6: bf16 inputs -> bf16 MXU operands, f32 accumulation/epilogue (loose tolerance).
    x_b = x.astype(jnp.bfloat16)
    style_b = style.astype(jnp.bfloat16)
    out = modulated_conv2d(x_b, style_b, conv_weight, mod_weight, mod_bias,
                           demodulate=True, first_k_oup=8)
    ref = _reference(x_b.astype(jnp.float32), style_b.astype(jnp.float32),
                     conv_weight, mod_weight, mod_bias,
                     demodulate=True, first_k_oup=8)
    ok = check(out, ref, 1e-1, 5e-2, "bf16") and ok

    if ok:
        print("KERNEL_OK")
</pallas_src>

<mosaic_0001>
module attributes {stable_mosaic.version = 11 : i64} {
  func.func @_conv_im2col_kernel(%arg0: i32, %arg1: i32, %arg2: i32, %arg3: memref<1x4x1xf32, #tpu.memory_space<vmem>>, %arg4: memref<1x8x1xf32, #tpu.memory_space<vmem>>, %arg5: memref<1x1x4x512xf32, #tpu.memory_space<vmem>>, %arg6: memref<8x36xf32, #tpu.memory_space<vmem>>, %arg7: memref<1x1x8x384xf32, #tpu.memory_space<vmem>>, %arg8: memref<36x384xf32, #tpu.memory_space<vmem>>) attributes {dimension_semantics = [#tpu.dimension_semantics<parallel>, #tpu.dimension_semantics<parallel>, #tpu.dimension_semantics<parallel>], iteration_bounds = array<i64: 2, 1, 1>, scalar_prefetch = 0 : i64, scratch_operands = 1 : i64, tpu.core_type = #tpu.core_type<tc>, window_params = [{transform_indices = @transform_0, window_bounds = array<i64: 1, 4, 1>}, {transform_indices = @transform_1, window_bounds = array<i64: 1, 8, 1>}, {transform_indices = @transform_2, window_bounds = array<i64: 1, 1, 4, 512>}, {transform_indices = @transform_3, window_bounds = array<i64: 8, 36>}, {transform_indices = @transform_4, window_bounds = array<i64: 1, 1, 8, 384>}]} {
    %c0 = arith.constant 0 : index
    %c0_0 = arith.constant 0 : index
    %c0_1 = arith.constant 0 : index
    %0 = vector.load %arg3[%c0, %c0_0, %c0_1] : memref<1x4x1xf32, #tpu.memory_space<vmem>>, vector<1x4x1xf32>
    %1 = vector.shape_cast %0 : vector<1x4x1xf32> to vector<4x1xf32>
    %c0_2 = arith.constant 0 : index
    %c0_3 = arith.constant 0 : index
    %c0_4 = arith.constant 0 : index
    %c0_5 = arith.constant 0 : index
    %2 = vector.load %arg5[%c0_2, %c0_3, %c0_4, %c0_5] : memref<1x1x4x512xf32, #tpu.memory_space<vmem>>, vector<1x1x4x384xf32>
    %3 = vector.shape_cast %2 : vector<1x1x4x384xf32> to vector<4x384xf32>
    %4 = vector.broadcast %1 : vector<4x1xf32> to vector<4x384xf32>
    %5 = arith.mulf %3, %4 : vector<4x384xf32>
    %c0_6 = arith.constant 0 : index
    %c0_7 = arith.constant 0 : index
    %6 = vector.load %arg8[%c0_6, %c0_7] : memref<36x384xf32, #tpu.memory_space<vmem>>, vector<4x384xf32>
    tpu.vector_store %arg8[%c0_6, %c0_7], %5 {strides = array<i32>} : memref<36x384xf32, #tpu.memory_space<vmem>>, vector<4x384xf32>,
    %c0_8 = arith.constant 0 : index
    %c0_9 = arith.constant 0 : index
    %c0_10 = arith.constant 0 : index
    %c1 = arith.constant 1 : index
    %7 = vector.load %arg5[%c0_8, %c0_9, %c0_10, %c1] : memref<1x1x4x512xf32, #tpu.memory_space<vmem>>, vector<1x1x4x384xf32>
    %8 = vector.shape_cast %7 : vector<1x1x4x384xf32> to vector<4x384xf32>
    %9 = vector.broadcast %1 : vector<4x1xf32> to vector<4x384xf32>
    %10 = arith.mulf %8, %9 : vector<4x384xf32>
    %c4 = arith.constant 4 : index
    %c0_11 = arith.constant 0 : index
    %11 = vector.load %arg8[%c4, %c0_11] : memref<36x384xf32, #tpu.memory_space<vmem>>, vector<4x384xf32>
    tpu.vector_store %arg8[%c4, %c0_11], %10 {strides = array<i32>} : memref<36x384xf32, #tpu.memory_space<vmem>>, vector<4x384xf32>,
    %c0_12 = arith.constant 0 : index
    %c0_13 = arith.constant 0 : index
    %c0_14 = arith.constant 0 : index
    %c2 = arith.constant 2 : index
    %12 = vector.load %arg5[%c0_12, %c0_13, %c0_14, %c2] : memref<1x1x4x512xf32, #tpu.memory_space<vmem>>, vector<1x1x4x384xf32>
    %13 = vector.shape_cast %12 : vector<1x1x4x384xf32> to vector<4x384xf32>
    %14 = vector.broadcast %1 : vector<4x1xf32> to vector<4x384xf32>
    %15 = arith.mulf %13, %14 : vector<4x384xf32>
    %c8 = arith.constant 8 : index
    %c0_15 = arith.constant 0 : index
    %16 = vector.load %arg8[%c8, %c0_15] : memref<36x384xf32, #tpu.memory_space<vmem>>, vector<4x384xf32>
    tpu.vector_store %arg8[%c8, %c0_15], %15 {strides = array<i32>} : memref<36x384xf32, #tpu.memory_space<vmem>>, vector<4x384xf32>,
    %c0_16 = arith.constant 0 : index
    %c0_17 = arith.constant 0 : index
    %c0_18 = arith.constant 0 : index
    %c18 = arith.constant 18 : index
    %17 = vector.load %arg5[%c0_16, %c0_17, %c0_18, %c18] : memref<1x1x4x512xf32, #tpu.memory_space<vmem>>, vector<1x1x4x384xf32>
    %18 = vector.shape_cast %17 : vector<1x1x4x384xf32> to vector<4x384xf32>
    %19 = vector.broadcast %1 : vector<4x1xf32> to vector<4x384xf32>
    %20 = arith.mulf %18, %19 : vector<4x384xf32>
    %c12 = arith.constant 12 : index
    %c0_19 = arith.constant 0 : index
    %21 = vector.load %arg8[%c12, %c0_19] : memref<36x384xf32, #tpu.memory_space<vmem>>, vector<4x384xf32>
    tpu.vector_store %arg8[%c12, %c0_19], %20 {strides = array<i32>} : memref<36x384xf32, #tpu.memory_space<vmem>>, vector<4x384xf32>,
    %c0_20 = arith.constant 0 : index
    %c0_21 = arith.constant 0 : index
    %c0_22 = arith.constant 0 : index
    %c19 = arith.constant 19 : index
    %22 = vector.load %arg5[%c0_20, %c0_21, %c0_22, %c19] : memref<1x1x4x512xf32, #tpu.memory_space<vmem>>, vector<1x1x4x384xf32>
    %23 = vector.shape_cast %22 : vector<1x1x4x384xf32> to vector<4x384xf32>
    %24 = vector.broadcast %1 : vector<4x1xf32> to vector<4x384xf32>
    %25 = arith.mulf %23, %24 : vector<4x384xf32>
    %c16 = arith.constant 16 : index
    %c0_23 = arith.constant 0 : index
    %26 = vector.load %arg8[%c16, %c0_23] : memref<36x384xf32, #tpu.memory_space<vmem>>, vector<4x384xf32>
    tpu.vector_store %arg8[%c16, %c0_23], %25 {strides = array<i32>} : memref<36x384xf32, #tpu.memory_space<vmem>>, vector<4x384xf32>,
    %c0_24 = arith.constant 0 : index
    %c0_25 = arith.constant 0 : index
    %c0_26 = arith.constant 0 : index
    %c20 = arith.constant 20 : index
    %27 = vector.load %arg5[%c0_24, %c0_25, %c0_26, %c20] : memref<1x1x4x512xf32, #tpu.memory_space<vmem>>, vector<1x1x4x384xf32>
    %28 = vector.shape_cast %27 : vector<1x1x4x384xf32> to vector<4x384xf32>
    %29 = vector.broadcast %1 : vector<4x1xf32> to vector<4x384xf32>
    %30 = arith.mulf %28, %29 : vector<4x384xf32>
    %c20_27 = arith.constant 20 : index
    %c0_28 = arith.constant 0 : index
    %31 = vector.load %arg8[%c20_27, %c0_28] : memref<36x384xf32, #tpu.memory_space<vmem>>, vector<4x384xf32>
    tpu.vector_store %arg8[%c20_27, %c0_28], %30 {strides = array<i32>} : memref<36x384xf32, #tpu.memory_space<vmem>>, vector<4x384xf32>,
    %c0_29 = arith.constant 0 : index
    %c0_30 = arith.constant 0 : index
    %c0_31 = arith.constant 0 : index
    %c36 = arith.constant 36 : index
    %32 = vector.load %arg5[%c0_29, %c0_30, %c0_31, %c36] : memref<1x1x4x512xf32, #tpu.memory_space<vmem>>, vector<1x1x4x384xf32>
    %33 = vector.shape_cast %32 : vector<1x1x4x384xf32> to vector<4x384xf32>
    %34 = vector.broadcast %1 : vector<4x1xf32> to vector<4x384xf32>
    %35 = arith.mulf %33, %34 : vector<4x384xf32>
    %c24 = arith.constant 24 : index
    %c0_32 = arith.constant 0 : index
    %36 = vector.load %arg8[%c24, %c0_32] : memref<36x384xf32, #tpu.memory_space<vmem>>, vector<4x384xf32>
    tpu.vector_store %arg8[%c24, %c0_32], %35 {strides = array<i32>} : memref<36x384xf32, #tpu.memory_space<vmem>>, vector<4x384xf32>,
    %c0_33 = arith.constant 0 : index
    %c0_34 = arith.constant 0 : index
    %c0_35 = arith.constant 0 : index
    %c37 = arith.constant 37 : index
    %37 = vector.load %arg5[%c0_33, %c0_34, %c0_35, %c37] : memref<1x1x4x512xf32, #tpu.memory_space<vmem>>, vector<1x1x4x384xf32>
    %38 = vector.shape_cast %37 : vector<1x1x4x384xf32> to vector<4x384xf32>
    %39 = vector.broadcast %1 : vector<4x1xf32> to vector<4x384xf32>
    %40 = arith.mulf %38, %39 : vector<4x384xf32>
    %c28 = arith.constant 28 : index
    %c0_36 = arith.constant 0 : index
    %41 = vector.load %arg8[%c28, %c0_36] : memref<36x384xf32, #tpu.memory_space<vmem>>, vector<4x384xf32>
    tpu.vector_store %arg8[%c28, %c0_36], %40 {strides = array<i32>} : memref<36x384xf32, #tpu.memory_space<vmem>>, vector<4x384xf32>,
    %c0_37 = arith.constant 0 : index
    %c0_38 = arith.constant 0 : index
    %c0_39 = arith.constant 0 : index
    %c38 = arith.constant 38 : index
    %42 = vector.load %arg5[%c0_37, %c0_38, %c0_39, %c38] : memref<1x1x4x512xf32, #tpu.memory_space<vmem>>, vector<1x1x4x384xf32>
    %43 = vector.shape_cast %42 : vector<1x1x4x384xf32> to vector<4x384xf32>
    %44 = vector.broadcast %1 : vector<4x1xf32> to vector<4x384xf32>
    %45 = arith.mulf %43, %44 : vector<4x384xf32>
    %c32 = arith.constant 32 : index
    %c0_40 = arith.constant 0 : index
    %46 = vector.load %arg8[%c32, %c0_40] : memref<36x384xf32, #tpu.memory_space<vmem>>, vector<4x384xf32>
    tpu.vector_store %arg8[%c32, %c0_40], %45 {strides = array<i32>} : memref<36x384xf32, #tpu.memory_space<vmem>>, vector<4x384xf32>,
    %c0_41 = arith.constant 0 : index
    %c0_42 = arith.constant 0 : index
    %47 = vector.load %arg6[%c0_41, %c0_42] : memref<8x36xf32, #tpu.memory_space<vmem>>, vector<8x36xf32>
    %c0_43 = arith.constant 0 : index
    %c0_44 = arith.constant 0 : index
    %48 = vector.load %arg8[%c0_43, %c0_44] : memref<36x384xf32, #tpu.memory_space<vmem>>, vector<36x384xf32>
    %cst = arith.constant dense<0.000000e+00> : vector<8x384xf32>
    %49 = tpu.matmul %47, %48, %cst {dimension_numbers = #tpu.dot_dimension_numbers<[1], [0], [0], [1], [0, 0, 1, 1], [], []>} : vector<8x36xf32>, vector<36x384xf32>, vector<8x384xf32> -> vector<8x384xf32>
    %c0_45 = arith.constant 0 : index
    %c0_46 = arith.constant 0 : index
    %c0_47 = arith.constant 0 : index
    %50 = vector.load %arg4[%c0_45, %c0_46, %c0_47] : memref<1x8x1xf32, #tpu.memory_space<vmem>>, vector<1x8x1xf32>
    %51 = vector.shape_cast %50 : vector<1x8x1xf32> to vector<8x1xf32>
    %52 = vector.broadcast %51 : vector<8x1xf32> to vector<8x384xf32>
    %53 = arith.mulf %49, %52 : vector<8x384xf32>
    %c0_48 = arith.constant 0 : index
    %c0_49 = arith.constant 0 : index
    %c0_50 = arith.constant 0 : index
    %c0_51 = arith.constant 0 : index
    %54 = vector.load %arg7[%c0_48, %c0_49, %c0_50, %c0_51] : memref<1x1x8x384xf32, #tpu.memory_space<vmem>>, vector<1x1x8x384xf32>
    %55 = vector.shape_cast %54 : vector<1x1x8x384xf32> to vector<8x384xf32>
    %56 = vector.shape_cast %53 : vector<8x384xf32> to vector<1x1x8x384xf32>
    tpu.vector_store %arg7[%c0_48, %c0_49, %c0_50, %c0_51], %56 {strides = array<i32>} : memref<1x1x8x384xf32, #tpu.memory_space<vmem>>, vector<1x1x8x384xf32>,
    return
  }
  func.func @transform_0(%arg0: i32, %arg1: i32, %arg2: i32) -> (i32, i32, i32) {
    %c0_i32 = arith.constant 0 : i32
    %c0_i32_0 = arith.constant 0 : i32
    %c0_i32_1 = arith.constant 0 : i32
    return %arg0, %c0_i32, %c0_i32_0 : i32, i32, i32
  }
  func.func @transform_1(%arg0: i32, %arg1: i32, %arg2: i32) -> (i32, i32, i32) {
    %c0_i32 = arith.constant 0 : i32
    %c0_i32_0 = arith.constant 0 : i32
    return %arg0, %arg2, %c0_i32 : i32, i32, i32
  }
  func.func @transform_2(%arg0: i32, %arg1: i32, %arg2: i32) -> (i32, i32, i32, i32) {
    %c0_i32 = arith.constant 0 : i32
    %c0_i32_0 = arith.constant 0 : i32
    %c0_i32_1 = arith.constant 0 : i32
    return %arg0, %arg1, %c0_i32, %c0_i32_0 : i32, i32, i32, i32
  }
  func.func @transform_3(%arg0: i32, %arg1: i32, %arg2: i32) -> (i32, i32) {
    %c0_i32 = arith.constant 0 : i32
    %c0_i32_0 = arith.constant 0 : i32
    return %arg2, %c0_i32 : i32, i32
  }
  func.func @transform_4(%arg0: i32, %arg1: i32, %arg2: i32) -> (i32, i32, i32, i32) {
    %c0_i32 = arith.constant 0 : i32
    %c0_i32_0 = arith.constant 0 : i32
    return %arg0, %arg1, %arg2, %c0_i32 : i32, i32, i32, i32
  }
}

</mosaic_0001>

<bundles_post_ra>
// kernel: tpu_custom_call.1
= control target key start
LH: loop header
LB: loop body
LE: loop exit
PB: predicated region body
PF: predicated region fallthrough
CT: control target
= control target key end

     0   :  { %9 = vsyncpa [#allocation4], 0  ;;  %s1364_s0 = inlined_call_operand.vmem [shape: f32[2,4,1], index: 0, kind: input, shape index: {}]   ;;  %s1365_s1 = inlined_call_operand.vmem [shape: f32[2,8,1], index: 1, kind: input, shape index: {}]   ;;  %s1366_s2 = inlined_call_operand.hbm [shape: f32[2,1,4,512], index: 2, kind: input, shape index: {}]   ;;  %s1367_s3 = inlined_call_operand.vmem [shape: f32[8,36], index: 3, kind: input, shape index: {}]   ;;  %s1368_s4 = inlined_call_operand.hbm [shape: f32[2,1,8,384], index: 4, kind: output, shape index: {}]  }
   0x1   :  { %11 = vsyncpa [#allocation4 + $0x1], 0 }
   0x2   :  { %12 = vsyncpa [#allocation5], 0 }
   0x3   :  { %14 = vsyncpa [#allocation5 + $0x1], 0  ;;  %s1134_s15 = smov 0   ;;  %s1136_s16 = smov 0  }
   0x4   :  { %s1138_s17 = smov 0   ;;  %s1140_s18 = smov 0  }
   0x5   :  { %s1142_s19 = smov 0   ;;  %s1144_s20 = smov 0  }
   0x6 LB: > { %s867_s21 = sadd.s32 4294967295, %s1093_s20   ;;  %s868_s22 = sadd.s32 4294967294, %s1093_s20   ;;  %s1093_s20 = sphi %s1144_s20, %s20_s20   ;;  %s1089_s19 = sphi %s1142_s19, %s1380_s19   ;;  %s1085_s18 = sphi %s1140_s18, %s1379_s18   ;;  %s1081_s17 = sphi %s1138_s17, %s1378_s17   ;;  %s1077_s16 = sphi %s1136_s16, %s1377_s16   ;;  %s1073_s15 = sphi %s1134_s15, %s1376_s15  }
   0x7   : > { %s39_s23 = sadd.s32 1, %s1089_s19  ;;  %s102_s24 = sadd.s32 1, %s1081_s17 }
   0x8   : > { %p41_p0 = scmp.ge.s32.totalorder %s39_s23, 2  ;;  %p109_p1 = scmp.ne.s32.totalorder %s1081_s17, %s1077_s16 }
   0x9   : > { %p110_p2 = scmp.eq.s32.totalorder %s1093_s20, 0  ;;  %p115_p3 = scmp.ne.s32.totalorder %s1077_s16, %s1073_s15 }
   0xa   : > { %s1382_s23 = smov (%p41_p0, %s39_s23), 0  ;;  %p116_p5 = scmp.eq.s32.totalorder %s867_s21, 0 }
   0xb   : > { %p1175_p4 = por %p110_p2, %p109_p1  ;;  %s97_s26 = ssub.s32 %s1089_s19, %s1382_s23 }
   0xc   : > { %p169_p6 = scmp.eq.s32.totalorder %s867_s21, 1  ;;  %p100_p7 = scmp.eq.s32.totalorder %s97_s26, 0 }
   0xd   : > { %p1181_p8 = por %p116_p5, %p115_p3  ;;  %p175_p10 = scmp.eq.s32.totalorder %s868_s22, 1 }
   0xe   : > { %p1185_p9 = por %p169_p6, %p109_p1  ;;  %p921_p13 = scmp.lt.s32.totalorder %s1093_s20, 2 }
   0xf   : > { %s1190_s29 = scalar_select %p100_p7, %s1081_s17, %s102_s24  }
  0x10   : > { %p1192_p11 = por %p175_p10, %p115_p3  ;;  %s219_s5 = sand.u32 1, %s1081_s17  }
  0x11   : > { %s872_s6 = sshll.u32 %s219_s5, 4  ;;  %s887_s7 = sshll.u32 %s1089_s19, 8 }
  0x12   : > { %s1372_s30 = scalar_select %p1192_p11, 1, 0 }
  0x13   : > { %s231_s10 = scalar_lea.hbm %s1366_s2, %s887_s7  ;;  %s223_s11 = scalar_lea.vmem [#allocation3], %s872_s6 }
  0x14   : > { %s233_s12 = sshll.u32 %s223_s11, 4  ;;  %p1205_p0 = pnand %p921_p13, %p1175_p4  ;;  %s234_s12 = int_to_ptr.vmem [resolvable:$true] %s233_s12 }
  0x15   : > { %p875_p1 = scmp.ge.s32.totalorder %s1093_s20, 1  ;;  %p238_p2 = scmp.lt.s32.totalorder %s1093_s20, 3 }
  0x16   : > { %s220_s14 = scalar_lea.sflag [#allocation4], %s219_s5  ;;  %p987_p3 = pneg %p1205_p0 }
  0x17   : > { %s998_s21 = scalar_lea.vmem %s234_s12, 256  ;;  %s1095_s22 = smov [#allocation3]  }
  0x18   : > { %p999_p5 = scmp.ne.s32.totalorder %s234_s12, %s998_s21  ;;  %s1003_s24 = sshll.u32 %s1095_s22, 4  ;;  %s1004_s24 = int_to_ptr.vmem [resolvable:$false] %s1003_s24 }
  0x19   : > { %s1005_s26 = scalar_lea.vmem %s1004_s24, 512  ;;  %p1006_p10 = scmp.lt.s32.totalorder %s234_s12, %s1004_s24 }
  0x1a   : > { %p1001_p6 = pnand %p999_p5, %p987_p3  ;;  %p1007_p12 = scmp.lt.s32.totalorder %s1005_s26, %s998_s21 }
  0x1c   : > { %p1002_p7 = pneg %p1001_p6  ;;  %p1008_p4 = por %p1007_p12, %p1006_p10 }
  0x1e   : > { %p1009_p13 = pnand %p1008_p4, %p1002_p7 }
  0x20   : > { %1012 = shalt.err (!%p1009_p13)
}
  0x21   : > { %916 = dma.hbm_to_vmem [thread:$0]  (!%p1205_p0), %s231_s10, 256, %s234_s12, %s220_s14  }
  0x22   : > { %p239_p11 = pnand %p875_p1, %p238_p2 }
  0x23   : > { %s1220_s25 = sand.u32 (!%p239_p11), 1, %s1077_s16  }
  0x24   : > { %242 = sbr.rel (%p239_p11) target bundleno = 572 (0x23c), region = 36  ;;  %s876_s5 = sshll.u32 (!%p239_p11), %s1220_s25, 4 }
  0x25   : > { %s245_s6 = scalar_lea.sflag (!%p239_p11), [#allocation4], %s1220_s25  ;;  %s248_s7 = scalar_lea.vmem (!%p239_p11), [#allocation3], %s876_s5 }
  0x29   : > { %1064 = dma.done.wait (%p1181_p8), %s245_s6, 256  }
  0x2a   : > { %1066 = vsyncadd (%p1181_p8), %s245_s6, 4294967040  ;;  %p288_p12 = scmp.lt.s32.totalorder %s1085_s18, 1  ;;  %v1096_v0 = vmov 0   ;;  %v1097_v2 = vmov 839922192   ;;  %v313_v4 = vlaneseq  ;;  %v509_v9 = vld [vmem:[%s248_s7 + $0x8] sm:$0xff] }
  0x2b   : > { %983 = vset.pattern.permute.xlu0 %v1096_v0  ;;  %984 = vset.pattern.permute.xlu1 %v1096_v0  ;;  %v311_v3 = vunpack.c.l.s4 %v1097_v2  ;;  %v482_v10 = vld [vmem:[%s248_s7] sm:$0xff]  ;;  %v305_v11 = vld [vmem:[%s248_s7 + $0x8] sm:$0xf]  ;;  %s1098_s27 = smov 90   ;;  %s1099_s13 = smov 91   ;;  %v1106_v17 = vmov 0.0  }
  0x2c   : > { %s1230_s8 = scalar_select %p288_p12, %s1085_s18, 1  ;;  %v314_v6 = vshrl.u32 %v313_v4, 7  ;;  %894 = vmatprep.subr.mxu1 %v1106_v17  ;;  %628 = vmatprep.mubr.f32.mxu0 %v1106_v17  ;;  %vm1107_vm0 = vmmov 0   ;;  %vm524_vm1 = vcmask 736256   ;;  %vm472_vm2 = vcmask 752640  }
  0x2d   : > { %v312_v5 = vunpack.c.0.s8 %v311_v3  ;;  %s1100_s14 = smov 92   ;;  %s1101_s21 = smov 109   ;;  %904 = vmatprep.mubr.msk.f32.mxu1 %vm1107_vm0, %v1106_v17  ;;  %vm498_vm3 = vcmask 744448   ;;  %vm554_vm4 = vcmask 1043456   ;;  %vm446_vm5 = vcmask 883712  }
  0x2e   : > { %s877_s9 = sshll.u32 %s1230_s8, 2  ;;  %s1102_s22 = smov 108   ;;  %vm420_vm6 = vcmask 891904   ;;  %vm394_vm7 = vcmask 900096   ;;  %vm368_vm8 = vcmask 1031168   ;;  %vm342_vm9 = vcmask 1039360  }
  0x2f   : > { %s291_s12 = scalar_lea.vmem %s1364_s0, %s877_s9  ;;  %v315_v7 = vsub.s32 %v312_v5, %v314_v6  ;;  %s1103_s24 = smov 126   ;;  %vm550_vm10 = vcmask 293888  }
  0x30   : > { %v303_v1 = vld [vmem:[%s291_s12] sm:$0xf]  ;;  %s1104_s26 = smov 110   ;;  %s1105_s5 = smov 127  }
  0x31   : > { %308 = vperm.xlu0 %983, %v303_v1   ;;  %s878_s6 = sshll.u32 %s1230_s8, 3  ;;  %s907_s12 = smul.u32 24, %s1220_s25 }
  0x32   : > { %s298_s10 = scalar_lea.vmem %s1365_s1, %s878_s6  ;;  %s1108_s6 = smov [#allocation6]  }
  0x33   : > { %v705_v21 = vld [vmem:[%s298_s10] sm:$0xff] }
  0xac   : > { %v309_v8 = vpop.permute.xlu0 %308 }
  0xad   : > { %v316_v12 = vrot.slane %v309_v8, %v315_v7 }
  0xaf   : > { %v511_v13 = vmul.f32 %v509_v9, %v316_v12  ;;  %v484_v14 = vmul.f32 %v482_v10, %v316_v12  ;;  %v319_v15 = vmul.f32 %v316_v12, %v305_v11 }
  0xb1   : > { %520 = vrot.lane.b32.xlu1 %v511_v13, %s1098_s27  ;;  %492 = vrot.lane.b32.xlu0 %v484_v14, %s1099_s13  ;;  %323 = vst [vmem:[#allocation2 + $0x30] sm:$0xf] %v484_v14  ;;  %325 = vst [vmem:[#allocation2 + $0x58] sm:$0xf] %v319_v15  ;;  %v321_v16 = vcombine.high %v484_v14, %v484_v14  ;;  %v515_v18 = vcombine.high %v511_v13, %v511_v13 }
  0xb2   : > { %v489_v19 = vcombine.low %v511_v13, %v511_v13  ;;  %v488_v20 = vcombine.low %v484_v14, %v484_v14 }
  0xb3   : > { %324 = vst [vmem:[#allocation2] sm:$0xf] %v321_v16 }
  0xb5   : > { %516 = vrot.lane.b32.xlu1 %v484_v14, %s1098_s27  ;;  %464 = vrot.lane.b32.xlu0 %v484_v14, %s1100_s14 }
  0xb9   : > { %468 = vrot.lane.b32.xlu1 %v511_v13, %s1100_s14  ;;  %416 = vrot.lane.b32.xlu0 %v511_v13, %s1101_s21 }
  0xbd   : > { %440 = vrot.lane.b32.xlu1 %v484_v14, %s1102_s22  ;;  %496 = vrot.lane.b32.xlu0 %v511_v13, %s1099_s13 }
  0xc1   : > { %412 = vrot.lane.b32.xlu1 %v484_v14, %s1101_s21  ;;  %364 = vrot.lane.b32.xlu0 %v511_v13, %s1103_s24 }
  0xc5   : > { %388 = vrot.lane.b32.xlu1 %v484_v14, %s1104_s26  ;;  %444 = vrot.lane.b32.xlu0 %v511_v13, %s1102_s22 }
  0xc9   : > { %518 = vrot.lane.b32.xlu0 %v321_v16, %s1098_s27  ;;  %360 = vrot.lane.b32.xlu1 %v484_v14, %s1103_s24 }
  0xcd   : > { %466 = vrot.lane.b32.xlu0 %v321_v16, %s1100_s14  ;;  %336 = vrot.lane.b32.xlu1 %v484_v14, %s1105_s5 }
  0xd1   : > { %522 = vrot.lane.b32.xlu0 %v515_v18, %s1098_s27  ;;  %494 = vrot.lane.b32.xlu1 %v489_v19, %s1099_s13  ;;  %s287_s27 = scalar_lea.vmem [#allocation6], %s907_s12 }
  0xd5   : > { %442 = vrot.lane.b32.xlu0 %v489_v19, %s1102_s22  ;;  %490 = vrot.lane.b32.xlu1 %v488_v20, %s1099_s13  ;;  %s908_s13 = smul.u32 384, %s1085_s18  ;;  %s1017_s18 = sshll.u32 %s1108_s6, 4  ;;  %s1018_s18 = int_to_ptr.vmem [resolvable:$false] %s1017_s18 }
  0xd6   : > { %s1019_s7 = scalar_lea.vmem %s1018_s18, 768 }
  0xd9   : > { %438 = vrot.lane.b32.xlu0 %v488_v20, %s1102_s22  ;;  %414 = vrot.lane.b32.xlu1 %v321_v16, %s1101_s21 }
  0xdd   : > { %390 = vrot.lane.b32.xlu0 %v489_v19, %s1104_s26  ;;  %470 = vrot.lane.b32.xlu1 %v515_v18, %s1100_s14  ;;  %s736_s14 = sshll.u32 %s287_s27, 4  ;;  %s737_s14 = int_to_ptr.vmem [resolvable:$true] %s736_s14 }
  0xde   : > { %p1020_p1 = scmp.lt.s32.totalorder %s737_s14, %s1018_s18 }
  0xe1   : > { %386 = vrot.lane.b32.xlu0 %v488_v20, %s1104_s26  ;;  %362 = vrot.lane.b32.xlu1 %v321_v16, %s1103_s24 }
  0xe5   : > { %338 = vrot.lane.b32.xlu0 %v489_v19, %s1105_s5  ;;  %418 = vrot.lane.b32.xlu1 %v515_v18, %s1101_s21 }
  0xe9   : > { %366 = vrot.lane.b32.xlu0 %v515_v18, %s1103_s24  ;;  %334 = vrot.lane.b32.xlu1 %v488_v20, %s1105_s5  ;;  %s1322_s24 = scalar_lea.hbm %s1368_s4, %s908_s13 }
  0xed   : > { %340 = vrot.lane.b32.xlu0 %v511_v13, %s1105_s5  ;;  %392 = vrot.lane.b32.xlu1 %v511_v13, %s1104_s26  ;;  %s718_s26 = scalar_lea.sflag [#allocation5], %s1220_s25  ;;  %s1013_s5 = scalar_lea.vmem %s737_s14, 384 }
  0xee   : > { %p1014_p8 = scmp.ne.s32.totalorder %s737_s14, %s1013_s5  ;;  %p1021_p2 = scmp.lt.s32.totalorder %s1019_s7, %s1013_s5 }
  0xf0   : > { %p1015_p11 = pnand %p1014_p8, %p1185_p9  ;;  %p1022_p3 = por %p1021_p2, %p1020_p1 }
  0xf1   : > { %708 = vperm.xlu1 %984, %v705_v21  }
  0xf2   : > { %p1016_p0 = pneg %p1015_p11 }
  0xf4   : > { %p1023_p5 = pnand %p1022_p3, %p1016_p0 }
 0x123   : > { %v521_v22 = vpop.permute.xlu1 %520  ;;  %v493_v23 = vpop.permute.xlu0 %492 }
 0x127   : > { %v517_v24 = vpop.permute.xlu1 %516  ;;  %v465_v25 = vpop.permute.xlu0 %464 }
 0x12b   : > { %v1263_v26 = vpop.permute.xlu1 %468  ;;  %v1265_v27 = vpop.permute.xlu0 %416 }
 0x12f   : > { %v441_v28 = vpop.permute.xlu1 %440  ;;  %v497_v29 = vpop.permute.xlu0 %496 }
 0x133   : > { %v413_v30 = vpop.permute.xlu1 %412  ;;  %v1267_v31 = vpop.permute.xlu0 %364 }
 0x137   : > { %v1269_v32 = vpop.permute.xlu1 %388  ;;  %v445_v33 = vpop.permute.xlu0 %444 }
 0x13b   : > { %v519_v34 = vpop.permute.xlu0 %518  ;;  %v1271_v35 = vpop.permute.xlu1 %360 }
 0x13c   : > { %v525_v36 = vsel %vm524_vm1, %v517_v24, %v519_v34  ;;  %v526_v37 = vsel %vm524_vm1, %v519_v34, %v521_v22 }
 0x13d   : > { %531 = vst [vmem:[#allocation2 + $0x60] sm:$0xf] %v525_v36  ;;  %532 = vst [vmem:[#allocation2 + $0x70] sm:$0xf] %v526_v37 }
 0x13f   : > { %v467_v38 = vpop.permute.xlu0 %466  ;;  %v1275_v39 = vpop.permute.xlu1 %336 }
 0x140   : > { %v473_v40 = vsel %vm472_vm2, %v465_v25, %v467_v38  ;;  %v474_v41 = vsel %vm472_vm2, %v467_v38, %v1263_v26 }
 0x141   : > { %479 = vst [vmem:[#allocation2 + $0x20] sm:$0xf] %v473_v40  ;;  %480 = vst [vmem:[#allocation2 + $0x10] sm:$0xf] %v474_v41 }
 0x143   : > { %v523_v42 = vpop.permute.xlu0 %522  ;;  %v495_v43 = vpop.permute.xlu1 %494 }
 0x144   : > { %v527_v44 = vsel %vm524_vm1, %v521_v22, %v523_v42  ;;  %v500_v45 = vsel %vm498_vm3, %v493_v23, %v495_v43  ;;  %v501_v46 = vsel %vm498_vm3, %v495_v43, %v497_v29  ;;  %v548_v47 = vld [vmem:[#allocation2 + $0x70] sm:$0xf]  ;;  %v547_v48 = vld [vmem:[#allocation2 + $0x60] sm:$0xf] }
 0x145   : > { %533 = vst [vmem:[#allocation2 + $0x28] sm:$0xf] %v527_v44  ;;  %506 = vst [vmem:[#allocation2 + $0x10] sm:$0xf0] %v500_v45  ;;  %879 = vmatprep.subr.msk.mxu0 %vm554_vm4, %v548_v47 }
 0x146   : > { %507 = vst [vmem:[#allocation2 + $0x38] sm:$0xf0] %v501_v46  ;;  %880 = vmatpush1.msk.msra.mxu0 %vm554_vm4, %v547_v48 }
 0x147   : > { %v443_v49 = vpop.permute.xlu0 %442  ;;  %v491_v50 = vpop.permute.xlu1 %490 }
 0x148   : > { %v448_v51 = vsel %vm446_vm5, %v441_v28, %v443_v49  ;;  %v449_v52 = vsel %vm446_vm5, %v443_v49, %v445_v33  ;;  %v499_v53 = vsel %vm498_vm3, %v491_v50, %v493_v23 }
 0x149   : > { %454 = vst [vmem:[#allocation2 + $0x48] sm:$0xf0] %v448_v51  ;;  %455 = vst [vmem:[#allocation2 + $0x40] sm:$0xf0] %v449_v52 }
 0x14a   : > { %505 = vst [vmem:[#allocation2 + $0x20] sm:$0xf0] %v499_v53 }
 0x14b   : > { %v439_v54 = vpop.permute.xlu0 %438  ;;  %v415_v55 = vpop.permute.xlu1 %414 }
 0x14c   : > { %v447_v56 = vsel %vm446_vm5, %v439_v54, %v441_v28  ;;  %v421_v57 = vsel %vm420_vm6, %v413_v30, %v415_v55  ;;  %v422_v58 = vsel %vm420_vm6, %v415_v55, %v1265_v27  ;;  %v545_v59 = vld [vmem:[#allocation2 + $0x10] sm:$0xff]  ;;  %v549_v60 = vld [vmem:[#allocation2 + $0x28] sm:$0xf] }
 0x14d   : > { %453 = vst [vmem:[#allocation2 + $0x8] sm:$0xf0] %v447_v56  ;;  %427 = vst [vmem:[#allocation2 + $0x8] sm:$0xf] %v421_v57  ;;  %588 = vmatprep.subr.mxu0 %v545_v59  ;;  %895 = vmatpush3.msk.msra.mxu1 %vm554_vm4, %v549_v60 }
 0x14e   : > { %428 = vst [vmem:[#allocation2 + $0x48] sm:$0xf] %v422_v58  ;;  %896 = vmatprep.subr.mxu1 %v1106_v17 }
 0x14f   : > { %v391_v61 = vpop.permute.xlu0 %390  ;;  %v471_v62 = vpop.permute.xlu1 %470 }
 0x150   : > { %v396_v63 = vsel %vm394_vm7, %v1269_v32, %v391_v61  ;;  %v475_v0 = vsel %vm472_vm2, %v1263_v26, %v471_v62 }
 0x151   : > { %v544_v1 = vld [vmem:[#allocation2 + $0x20] sm:$0xff]  ;;  %402 = vst [vmem:[#allocation2 + $0x50] sm:$0xf0] %v396_v63  ;;  %481 = vst [vmem:[#allocation2 + $0x38] sm:$0xf] %v475_v0 }
 0x152   : > { %589 = vmatpush1.msra.mxu0 %v544_v1 }
 0x153   : > { %v387_v2 = vpop.permute.xlu0 %386  ;;  %v363_v3 = vpop.permute.xlu1 %362 }
 0x154   : > { %v395_v4 = vsel %vm394_vm7, %v387_v2, %v1269_v32  ;;  %v369_v5 = vsel %vm368_vm8, %v1271_v35, %v363_v3  ;;  %v370_v6 = vsel %vm368_vm8, %v363_v3, %v1267_v31  ;;  %v541_v8 = vld [vmem:[#allocation2 + $0x8] sm:$0xff] }
 0x155   : > { %v542_v7 = vld [vmem:[#allocation2 + $0x48] sm:$0xff]  ;;  %401 = vst [vmem:[#allocation2 + $0x18] sm:$0xf0] %v395_v4  ;;  %375 = vst [vmem:[#allocation2 + $0x18] sm:$0xf] %v369_v5 }
 0x156   : > { %376 = vst [vmem:[#allocation2 + $0x50] sm:$0xf] %v370_v6  ;;  %590 = vmatprep.subr.mxu0 %v542_v7 }
 0x157   : > { %591 = vmatpush1.msra.mxu0 %v541_v8  ;;  %v339_v9 = vpop.permute.xlu0 %338  ;;  %v419_v10 = vpop.permute.xlu1 %418 }
 0x158   : > { %v344_v11 = vsel %vm342_vm9, %v1275_v39, %v339_v9  ;;  %v423_v12 = vsel %vm420_vm6, %v1265_v27, %v419_v10  ;;  %v546_v13 = vld [vmem:[#allocation2 + $0x38] sm:$0xff]  ;;  %v534_v27 = vld [vmem:[%s1367_s3] sm:$0xff] }
 0x159   : > { %350 = vst [vmem:[#allocation2] sm:$0xf0] %v344_v11  ;;  %429 = vst [vmem:[#allocation2 + $0x40] sm:$0xf] %v423_v12  ;;  %897 = vmatpush3.msra.mxu1 %v546_v13 }
 0x15a   : > { %898 = vmatprep.subr.mxu1 %v1106_v17 }
 0x15b   : > { %v367_v14 = vpop.permute.xlu0 %366  ;;  %v335_v15 = vpop.permute.xlu1 %334 }
 0x15c   : > { %v371_v16 = vsel %vm368_vm8, %v1267_v31, %v367_v14  ;;  %v343_v18 = vsel %vm342_vm9, %v335_v15, %v1275_v39  ;;  %v538_v20 = vld [vmem:[#allocation2 + $0x18] sm:$0xff] }
 0x15d   : > { %v539_v19 = vld [vmem:[#allocation2 + $0x50] sm:$0xff]  ;;  %377 = vst [vmem:[#allocation2 + $0x68] sm:$0xf] %v371_v16  ;;  %349 = vst [vmem:[#allocation2 + $0x30] sm:$0xf0] %v343_v18 }
 0x15e   : > { %592 = vmatprep.subr.mxu0 %v539_v19 }
 0x15f   : > { %593 = vmatpush1.msra.mxu0 %v538_v20  ;;  %v341_v21 = vpop.permute.xlu0 %340  ;;  %v393_v22 = vpop.permute.xlu1 %392 }
 0x160   : > { %v345_v23 = vsel %vm342_vm9, %v339_v9, %v341_v21  ;;  %v397_v24 = vsel %vm394_vm7, %v391_v61, %v393_v22  ;;  %v536_v25 = vld [vmem:[#allocation2] sm:$0xff] }
 0x161   : > { %v543_v26 = vld [vmem:[#allocation2 + $0x40] sm:$0xff]  ;;  %351 = vst [vmem:[#allocation2 + $0x58] sm:$0xf0] %v345_v23  ;;  %403 = vst [vmem:[#allocation2 + $0x68] sm:$0xf0] %v397_v24  ;;  %594 = vmatprep.subr.mxu0 %v536_v25 }
 0x162   : > { %899 = vmatpush3.msra.mxu1 %v543_v26 }
 0x163   : > { %900 = vmatprep.subr.mxu1 %v1106_v17 }
 0x164   : > { %v535_v28 = vld [vmem:[#allocation2 + $0x30] sm:$0xff] }
 0x165   : > { %595 = vmatpush1.msra.mxu0 %v535_v28 }
 0x166   : > { %881 = vmatmul.mubr.msk.f32.vlgmr.msra.gmra.mxu0 %vm550_vm10, %v534_v27 }
 0x168   : > { %v540_v29 = vld [vmem:[#allocation2 + $0x68] sm:$0xff]  ;;  %v537_v30 = vld [vmem:[#allocation2 + $0x58] sm:$0xff] }
 0x169   : > { %901 = vmatpush3.msra.mxu1 %v540_v29 }
 0x16a   : > { %902 = vmatprep.subr.mxu1 %v1106_v17 }
 0x16b   : > { %903 = vmatpush3.msra.mxu1 %v537_v30 }
 0x16c   : > { %905 = vmatmul.mubr.msk.f32.vlgmr.msra.gmra.mxu1 %vm550_vm10, %v534_v27  ;;  %v709_v31 = vpop.permute.xlu1 %708 }
 0x226   : > { %v630_v32 = vpop.f32.mrf.mxu0 }
 0x227   : > { %v711_v33 = vmul.f32 %v709_v31, %v630_v32 }
 0x228   : > { %v632_v34 = vpop.f32.mrf.mxu0 }
 0x229   : > { %714 = vst [vmem:[%s287_s27] sm:$0xff] %v711_v33  ;;  %v712_v35 = vmul.f32 %v709_v31, %v632_v34 }
 0x22b   : > { %715 = vst [vmem:[%s287_s27 + $0x8] sm:$0xff] %v712_v35 }
 0x22c   : > { %v701_v36 = vpop.f32.mrf.mxu1 }
 0x22d   : > { %v713_v37 = vmul.f32 %v709_v31, %v701_v36 }
 0x22e   : > { %v906_v17 = vpop.f32.mrf.mxu1 }
 0x22f   : > { %716 = vst [vmem:[%s287_s27 + $0x10] sm:$0xff] %v713_v37 }
 0x230   : > { %1026 = shalt.err (!%p1023_p5)
}
 0x231   : > { %s1027_s9 = scalar_lea.hbm %s1322_s24, 384  ;;  %s1031_s8 = scalar_lea.hbm %s1368_s4, 768 }
 0x232   : > { %p1028_p6 = scmp.ne.s32.totalorder %s1322_s24, %s1027_s9  ;;  %p1032_p4 = scmp.lt.s32.totalorder %s1322_s24, %s1368_s4 }
 0x233   : > { %p1033_p13 = scmp.lt.s32.totalorder %s1031_s8, %s1027_s9 }
 0x234   : > { %p1029_p7 = pnand %p1028_p6, %p1185_p9 }
 0x235   : > { %p1034_p12 = por %p1033_p13, %p1032_p4 }
 0x236   : > { %p1030_p10 = pneg %p1029_p7 }
 0x238   : > { %p1035_p8 = pnand %p1034_p12, %p1030_p10 }
 0x23a   : > { %1038 = shalt.err (!%p1035_p8)
}
 0x23b   : > { %911 = dma.vmem_to_hbm [thread:$0]  (%p1185_p9), %s737_s14, 384, %s1322_s24, %s718_s26  }
 0x23c PF: > { %s748_s27 = sand.u32 1, %s1073_s15   ;;  %p1374_p11 = scmp.ne.s32.totalorder %s1372_s30, 0 }
 0x23d   : > { %p1375_p0 = scmp.ge.s32.totalorder %s1093_s20, 2  ;;  %s749_s13 = scalar_lea.sflag [#allocation5], %s748_s27 }
 0x23f   : > { %p918_p1 = pnand %p1375_p0, %p1374_p11 }
 0x241   : > { %p919_p2 = pneg %p918_p1 }
 0x243   : > { %1068 = dma.done.wait (%p919_p2), %s749_s13, 384  }
 0x244   : > { %1070 = vsyncadd (%p919_p2), %s749_s13, 4294966912  ;;  %s20_s20 = sadd.s32 1, %s1093_s20   ;;  %s1376_s15 = smov %s1077_s16 }
 0x245   : > { %p17_p3 = scmp.ge.s32.totalorder %s20_s20, 4   ;;  %s1377_s16 = smov %s1081_s17 }
 0x246   : > { %s1378_s17 = smov %s1190_s29  ;;  %s1379_s18 = smov %s1089_s19 }
 0x247   : > { %s1380_s19 = smov %s1382_s23  ;;  %19 = sbr.rel (!%p17_p3) target bundleno = 6 (0x6), region = 90 }
 0x24c   :  { %754 = vsyncpa [#allocation4], 1 }
 0x24d   :  { %756 = vsyncpa [#allocation4 + $0x1], 1 }
 0x24e   :  { %757 = vsyncpa [#allocation5], 1 }
 0x24f   :  { %759 = vsyncpa [#allocation5 + $0x1], 1 }

</bundles_post_ra>
